<compile_context>
chip_gen: v7x
topology: tpu7x:2x2x1
jax: 0.10.0
libtpu: 0.0.40
codegen_flags: <defaults>
</compile_context>

<pallas_src>
import functools

import jax
import jax.numpy as jnp
from jax.experimental import pallas as pl
from jax.experimental.pallas import tpu as pltpu


def _round_up(x, m):
    return ((x + m - 1) // m) * m


# ----------------------------------------------------------------------------
# Fused kernel: every layer of the network, one (batch, time-tile) per step.
# ----------------------------------------------------------------------------
def _apply_activation(y, activation):
    if activation == "relu":
        return jnp.maximum(y, 0.0)
    if activation == "gelu":
        # PyTorch nn.GELU default is the exact (erf) formulation.
        return jax.nn.gelu(y, approximate=False)
    if activation == "mish":
        return y * jnp.tanh(jax.nn.softplus(y))
    # 'glu' halves the channel dim; rejected early in the wrapper.
    raise ValueError(f"Unsupported activation: {activation}")


def _fused_ccn_kernel(*refs, n_layers, kernel_size, dilation, halo, pad,
                      t_tile, activation):
    """Ref layout:
      [0]              x_ref (1, C_in, T_tile)   current input tile (NCW)
      [1 .. 2L]        w_0, b_0, ..., w_{L-1}, b_{L-1}
                         w_l: (K, C_out, C_in_l)   b_l: (C_out, 1) f32
      [1+2L]           o_ref (1, C_out, T_tile)
      [2+2L .. 1+3L]   A_l   (C_in_l, pad + T_tile)  layer-l staging + history
    """
    L = n_layers
    x_ref = refs[0]
    wb_refs = refs[1:1 + 2 * L]
    o_ref = refs[1 + 2 * L]
    a_refs = refs[2 + 2 * L:2 + 3 * L]

    ti = pl.program_id(1)

    if pad > 0:
        @pl.when(ti == 0)
        def _init_history():
            # Zero the whole 128-aligned lead block (lane-dense store).  Also
            # resets the causal history whenever a core starts a new batch.
            for a in a_refs:
                a[:, :pad] = jnp.zeros((a.shape[0], pad), dtype=a.dtype)

        @pl.when(ti > 0)
        def _carry_history():
            # Carry the last `halo` columns of the previous tile.  Tiny
            # (C, halo) copy; source/dest are disjoint because t_tile >= halo.
            for a in a_refs:
                a[:, pad - halo:pad] = a[:, pad + t_tile - halo:pad + t_tile]

    # Stage the current input tile at a lane-aligned offset (dense store).
    # x was already cast to the compute dtype in the wrapper -- no per-tile
    # astype here.
    a_refs[0][:, pad:] = x_ref[0]

    base = pad - halo
    for l in range(L):
        w_ref = wb_refs[2 * l]        # (K, C_out, C_in_l)
        b_ref = wb_refs[2 * l + 1]    # (C_out, 1) f32
        a = a_refs[l]                 # (C_in_l, pad + T_tile)
        # K taps accumulate in vregs (no VMEM accumulator); bias folded into
        # tap 0.  The last tap (k = K-1) reads at lane offset `pad`, i.e.
        # 128-aligned; the few earlier taps are misaligned *reads* only.
        acc = jnp.dot(w_ref[0], a[:, base:base + t_tile],
                      preferred_element_type=jnp.float32) + b_ref[...]
        for k in range(1, kernel_size):   # small static K -> unrolled
            s = base + k * dilation
            acc = acc + jnp.dot(w_ref[k], a[:, s:s + t_tile],
                                preferred_element_type=jnp.float32)
        y = _apply_activation(acc, activation)
        if l + 1 < L:
            a_refs[l + 1][:, pad:] = y.astype(a_refs[l + 1].dtype)
        else:
            o_ref[0] = y.astype(o_ref.dtype)


# ----------------------------------------------------------------------------
# Wrapper
# ----------------------------------------------------------------------------
def _pick_t_tile(T, halo, layer_cin, dim, c_bytes, o_bytes,
                 vmem_budget_bytes=40 << 20, t_pref=512):
    """Largest 128-multiple tile <= preference that fits the VMEM budget and
    is >= the causal halo (required by the in-VMEM history carry)."""
    pad = _round_up(halo, 128) if halo > 0 else 0
    per_col = (sum(layer_cin) * c_bytes          # staging/history buffers
               + 2 * layer_cin[0] * c_bytes      # double-buffered x tile
               + 2 * dim * o_bytes)              # double-buffered out tile
    fixed = sum(layer_cin) * pad * c_bytes
    t_cap = max(128, ((vmem_budget_bytes - fixed) // max(per_col, 1)) // 128 * 128)
    t_des = max(128, min(t_pref, _round_up(T, 128)))
    t_min = _round_up(max(halo, 1), 128)
    return max(min(max(t_des, t_min), t_cap), t_min)


def causal_context_network(x, params, config, *, mask=None, t_tile=None,
                           compute_dtype=None, out_dtype=None):
    """Forward pass matching CausalContextNetwork(use_subnets=False).

    x: (B, C_in, T) (PyTorch NCW layout). Returns (B, dim, T).
    """
    if mask is not None:
        raise NotImplementedError  # mirrors the reference module
    if config["activation"] == "glu":
        # TODO(synk): GLU halves the channel dim (inconsistent with the fixed
        # per-layer `dim` plumbing here); not supported.
        raise NotImplementedError("activation='glu' not supported")
    if config.get("groups", 1) != 1:
        raise NotImplementedError("groups != 1 not supported")
    for key in ("batch_normalization", "group_normalization",
                "instance_normalization"):
        if config.get(key, False):
            # TODO(synk): fused norm layers not implemented.
            raise NotImplementedError(f"{key}=True not supported")
    # TODO(synk): use_subnets=True (per-string sub-networks) not implemented.
    # Dropout is identity at inference; ignored here.

    B, C_in, T = x.shape
    L = config["n_layers"]
    K = config["kernel_size"]
    d = config["dilation"]
    dim = config["dim"]
    halo = (K - 1) * d
    pad = _round_up(halo, 128) if halo > 0 else 0
    assert len(params) == L

    if compute_dtype is None:
        compute_dtype = x.dtype
    if out_dtype is None:
        out_dtype = x.dtype
    c_bytes = jnp.dtype(compute_dtype).itemsize
    o_bytes = jnp.dtype(out_dtype).itemsize
    layer_cin = [C_in] + [dim] * (L - 1)

    if t_tile is None:
        t_tile = _pick_t_tile(T, halo, layer_cin, dim, c_bytes, o_bytes)
    if t_tile % 128 != 0:
        raise ValueError("t_tile must be a multiple of 128 (lane-dense stores)")
    if t_tile < halo:
        raise ValueError("t_tile must be >= (kernel_size-1)*dilation for the "
                         "causal history carry to be valid")

    # Right-pad T to a tile multiple; causal conv => padded tail never feeds
    # back into real outputs. Keeps every store lane-dense and bounds VMEM.
    T_pad = _round_up(T, t_tile)
    nt = T_pad // t_tile

    # Cast once in the wrapper (halves the x DMA on the bf16 path).
    x_op = x.astype(compute_dtype)
    if T_pad != T:
        x_op = jnp.pad(x_op, ((0, 0), (0, 0), (0, T_pad - T)))

    in_specs = [pl.BlockSpec((1, C_in, t_tile), lambda b, ti: (b, 0, ti))]
    operands = [x_op]
    scratch = []
    for l, (w, bias) in enumerate(params):            # w: (C_out, C_in_l, K)
        w_t = jnp.transpose(w, (2, 0, 1)).astype(compute_dtype)  # (K, C_out, C_in_l)
        b_t = bias.reshape(dim, 1).astype(jnp.float32)
        # Constant index_map -> fetched once per core; the double-buffer waste
        # is a few KB at these sizes, so we leave the default pipelining.
        in_specs.append(pl.BlockSpec(w_t.shape, lambda b, ti: (0, 0, 0)))
        in_specs.append(pl.BlockSpec(b_t.shape, lambda b, ti: (0, 0)))
        operands += [w_t, b_t]
        scratch.append(pltpu.VMEM((layer_cin[l], pad + t_tile), compute_dtype))

    # Explicit, v7x-safe (64 MiB/TC) VMEM limit derived from actual footprint.
    est = sum(c * (pad + t_tile) * c_bytes for c in layer_cin)          # scratch
    est += 2 * C_in * t_tile * c_bytes + 2 * dim * t_tile * o_bytes     # I/O blocks
    est += 2 * sum(K * dim * c * c_bytes + dim * 4 for c in layer_cin)  # weights
    vmem_limit = int(min(max(2 * est + (2 << 20), 32 << 20), 56 << 20))

    kernel = functools.partial(
        _fused_ccn_kernel, n_layers=L, kernel_size=K, dilation=d, halo=halo,
        pad=pad, t_tile=t_tile, activation=config["activation"])

    out = pl.pallas_call(
        kernel,
        out_shape=jax.ShapeDtypeStruct((B, dim, T_pad), out_dtype),
        grid=(B, nt),
        in_specs=in_specs,
        out_specs=pl.BlockSpec((1, dim, t_tile), lambda b, ti: (b, 0, ti)),
        scratch_shapes=scratch,
        compiler_params=pltpu.CompilerParams(
            # Batch axis independent (megacore-parallel). Time axis MUST stay
            # "arbitrary": the causal history carry lives in per-core VMEM
            # scratch and requires in-order time tiles per batch.
            dimension_semantics=("parallel", "arbitrary"),
            vmem_limit_bytes=vmem_limit),
    )(*operands)
    return out[:, :, :T] if T_pad != T else out


# ----------------------------------------------------------------------------
# Parameter init (matches nn.Conv1d default init, groups=1) + pure-JAX reference
# ----------------------------------------------------------------------------
def init_params(config, key):
    params = []
    in_ch = config["in_channels"]
    K = config["kernel_size"]
    for _ in range(config["n_layers"]):
        key, kw, kb = jax.random.split(key, 3)
        bound = 1.0 / jnp.sqrt(in_ch * K)
        w = jax.random.uniform(kw, (config["dim"], in_ch, K),
                               minval=-bound, maxval=bound, dtype=jnp.float32)
        b = jax.random.uniform(kb, (config["dim"],),
                               minval=-bound, maxval=bound, dtype=jnp.float32)
        params.append((w, b))
        in_ch = config["dim"]
    return params


def _reference(x_nct, params, config):
    """Pure-JAX reference (relu) for correctness checks only."""
    x = x_nct
    left = (config["kernel_size"] - 1) * config["dilation"]
    for (w, b) in params:
        xp = jnp.pad(x, ((0, 0), (0, 0), (left, 0)))
        y = jax.lax.conv_general_dilated(
            xp, w, window_strides=(1,), padding="VALID",
            rhs_dilation=(config["dilation"],),
            dimension_numbers=("NCH", "OIH", "NCH"))
        x = jnp.maximum(y + b[None, :, None], 0.0)
    return x


if __name__ == "__main__":
    base_config = {
        "in_channels": 4,
        "dim": 32,
        "n_layers": 2,
        "kernel_size": 3,
        "dilation": 1,
        "groups": 1,
        "batch_normalization": False,
        "group_normalization": False,
        "instance_normalization": False,
        "activation": "relu",
        "dropout": 0.0,
        "num_strings": 6,   # unused when use_subnets=False
    }

    root_key = jax.random.PRNGKey(0)

    def run_check(config, B, T, t_tile=None, compute_dtype=None,
                  atol=1e-4, rtol=1e-4):
        kx, kp = jax.random.split(
            jax.random.fold_in(root_key, T + 7 * config["dilation"]))
        x = jax.random.normal(kx, (B, config["in_channels"], T), jnp.float32)
        params = init_params(config, kp)
        out = jax.block_until_ready(
            causal_context_network(x, params, config, t_tile=t_tile,
                                   compute_dtype=compute_dtype))
        ref = jax.block_until_ready(_reference(x, params, config))
        assert out.shape == (B, config["dim"], T)
        max_err = jnp.max(jnp.abs(out - ref))
        assert jnp.allclose(out, ref, atol=atol, rtol=rtol), (
            f"mismatch T={T} tile={t_tile} dtype={compute_dtype}: {max_err}")

    # 1) small shape per the module spec (auto tile=128, exercises T padding)
    run_check(base_config, B=2, T=16)
    # 2) multi-tile path: exercises the in-kernel causal halo carry
    run_check(base_config, B=2, T=256, t_tile=128)
    # 3) dilation > 1 (larger halo, still lane-aligned staging)
    run_check(dict(base_config, dilation=2), B=2, T=256, t_tile=128)
    # 4) ragged T: right-padded last tile + carry across 3 tiles
    run_check(base_config, B=2, T=300, t_tile=128)
    # 5) bf16 storage/matmul path (f32 accumulation), loose tolerance
    run_check(base_config, B=2, T=256, t_tile=128,
              compute_dtype=jnp.bfloat16, atol=1e-1, rtol=5e-2)

    print("KERNEL_OK")
</pallas_src>

<mosaic_0001>
module attributes {stable_mosaic.version = 11 : i64} {
  func.func @_fused_ccn_kernel(%arg0: i32, %arg1: i32, %arg2: memref<1x4x128xf32, #tpu.memory_space<vmem>>, %arg3: memref<3x32x4xf32, #tpu.memory_space<vmem>>, %arg4: memref<32x1xf32, #tpu.memory_space<vmem>>, %arg5: memref<3x32x32xf32, #tpu.memory_space<vmem>>, %arg6: memref<32x1xf32, #tpu.memory_space<vmem>>, %arg7: memref<1x32x128xf32, #tpu.memory_space<vmem>>, %arg8: memref<4x256xf32, #tpu.memory_space<vmem>>, %arg9: memref<32x256xf32, #tpu.memory_space<vmem>>) attributes {dimension_semantics = [#tpu.dimension_semantics<parallel>, #tpu.dimension_semantics<arbitrary>], iteration_bounds = array<i64: 2, 1>, scalar_prefetch = 0 : i64, scratch_operands = 2 : i64, tpu.core_type = #tpu.core_type<tc>, window_params = [{transform_indices = @transform_0, window_bounds = array<i64: 1, 4, 128>}, {pipeline_mode = #tpu.pipeline_mode<synchronous>, transform_indices = @transform_1, window_bounds = array<i64: 3, 32, 4>}, {pipeline_mode = #tpu.pipeline_mode<synchronous>, transform_indices = @transform_2, window_bounds = array<i64: 32, 1>}, {pipeline_mode = #tpu.pipeline_mode<synchronous>, transform_indices = @transform_3, window_bounds = array<i64: 3, 32, 32>}, {pipeline_mode = #tpu.pipeline_mode<synchronous>, transform_indices = @transform_4, window_bounds = array<i64: 32, 1>}, {transform_indices = @transform_5, window_bounds = array<i64: 1, 32, 128>}]} {
    %c0_i32 = arith.constant 0 : i32
    %0 = arith.cmpi eq, %arg1, %c0_i32 : i32
    %1 = arith.extui %0 : i1 to i32
    %c0_i32_0 = arith.constant 0 : i32
    %2 = arith.cmpi ne, %1, %c0_i32_0 : i32
    scf.if %2 {
      %cst_48 = arith.constant 0.000000e+00 : f32
      %51 = vector.broadcast %cst_48 : f32 to vector<4x128xf32>
      %c0_49 = arith.constant 0 : index
      %c0_50 = arith.constant 0 : index
      %52 = vector.load %arg8[%c0_49, %c0_50] : memref<4x256xf32, #tpu.memory_space<vmem>>, vector<4x128xf32>
      tpu.vector_store %arg8[%c0_49, %c0_50], %51 {strides = array<i32>} : memref<4x256xf32, #tpu.memory_space<vmem>>, vector<4x128xf32>,
      %cst_51 = arith.constant 0.000000e+00 : f32
      %53 = vector.broadcast %cst_51 : f32 to vector<32x128xf32>
      %c0_52 = arith.constant 0 : index
      %c0_53 = arith.constant 0 : index
      %54 = vector.load %arg9[%c0_52, %c0_53] : memref<32x256xf32, #tpu.memory_space<vmem>>, vector<32x128xf32>
      tpu.vector_store %arg9[%c0_52, %c0_53], %53 {strides = array<i32>} : memref<32x256xf32, #tpu.memory_space<vmem>>, vector<32x128xf32>,
    } else {
    }
    %c0_i32_1 = arith.constant 0 : i32
    %3 = arith.cmpi sgt, %arg1, %c0_i32_1 : i32
    %4 = arith.extui %3 : i1 to i32
    %c0_i32_2 = arith.constant 0 : i32
    %5 = arith.cmpi ne, %4, %c0_i32_2 : i32
    scf.if %5 {
      %c0_48 = arith.constant 0 : index
      %c254 = arith.constant 254 : index
      %51 = vector.load %arg8[%c0_48, %c254] : memref<4x256xf32, #tpu.memory_space<vmem>>, vector<4x2xf32>
      %c0_49 = arith.constant 0 : index
      %c126_50 = arith.constant 126 : index
      %52 = vector.load %arg8[%c0_49, %c126_50] : memref<4x256xf32, #tpu.memory_space<vmem>>, vector<4x2xf32>
      tpu.vector_store %arg8[%c0_49, %c126_50], %51 {strides = array<i32>} : memref<4x256xf32, #tpu.memory_space<vmem>>, vector<4x2xf32>,
      %c0_51 = arith.constant 0 : index
      %c254_52 = arith.constant 254 : index
      %53 = vector.load %arg9[%c0_51, %c254_52] : memref<32x256xf32, #tpu.memory_space<vmem>>, vector<32x2xf32>
      %c0_53 = arith.constant 0 : index
      %c126_54 = arith.constant 126 : index
      %54 = vector.load %arg9[%c0_53, %c126_54] : memref<32x256xf32, #tpu.memory_space<vmem>>, vector<32x2xf32>
      tpu.vector_store %arg9[%c0_53, %c126_54], %53 {strides = array<i32>} : memref<32x256xf32, #tpu.memory_space<vmem>>, vector<32x2xf32>,
    } else {
    }
    %c0 = arith.constant 0 : index
    %c0_3 = arith.constant 0 : index
    %c0_4 = arith.constant 0 : index
    %6 = vector.load %arg2[%c0, %c0_3, %c0_4] : memref<1x4x128xf32, #tpu.memory_space<vmem>>, vector<1x4x128xf32>
    %7 = vector.shape_cast %6 : vector<1x4x128xf32> to vector<4x128xf32>
    %c0_5 = arith.constant 0 : index
    %c128 = arith.constant 128 : index
    %8 = vector.load %arg8[%c0_5, %c128] : memref<4x256xf32, #tpu.memory_space<vmem>>, vector<4x128xf32>
    tpu.vector_store %arg8[%c0_5, %c128], %7 {strides = array<i32>} : memref<4x256xf32, #tpu.memory_space<vmem>>, vector<4x128xf32>,
    %c0_6 = arith.constant 0 : index
    %c0_7 = arith.constant 0 : index
    %c0_8 = arith.constant 0 : index
    %9 = vector.load %arg3[%c0_6, %c0_7, %c0_8] : memref<3x32x4xf32, #tpu.memory_space<vmem>>, vector<1x32x4xf32>
    %10 = vector.shape_cast %9 : vector<1x32x4xf32> to vector<32x4xf32>
    %c0_9 = arith.constant 0 : index
    %c126 = arith.constant 126 : index
    %11 = vector.load %arg8[%c0_9, %c126] : memref<4x256xf32, #tpu.memory_space<vmem>>, vector<4x128xf32>
    %cst = arith.constant dense<0.000000e+00> : vector<32x128xf32>
    %12 = tpu.matmul %10, %11, %cst {dimension_numbers = #tpu.dot_dimension_numbers<[1], [0], [0], [1], [0, 0, 1, 1], [], []>} : vector<32x4xf32>, vector<4x128xf32>, vector<32x128xf32> -> vector<32x128xf32>
    %c0_10 = arith.constant 0 : index
    %c0_11 = arith.constant 0 : index
    %13 = vector.load %arg4[%c0_10, %c0_11] : memref<32x1xf32, #tpu.memory_space<vmem>>, vector<32x1xf32>
    %14 = vector.broadcast %13 : vector<32x1xf32> to vector<32x128xf32>
    %15 = arith.addf %12, %14 : vector<32x128xf32>
    %c1 = arith.constant 1 : index
    %c0_12 = arith.constant 0 : index
    %c0_13 = arith.constant 0 : index
    %16 = vector.load %arg3[%c1, %c0_12, %c0_13] : memref<3x32x4xf32, #tpu.memory_space<vmem>>, vector<1x32x4xf32>
    %17 = vector.shape_cast %16 : vector<1x32x4xf32> to vector<32x4xf32>
    %c0_14 = arith.constant 0 : index
    %c127 = arith.constant 127 : index
    %18 = vector.load %arg8[%c0_14, %c127] : memref<4x256xf32, #tpu.memory_space<vmem>>, vector<4x128xf32>
    %cst_15 = arith.constant dense<0.000000e+00> : vector<32x128xf32>
    %19 = tpu.matmul %17, %18, %cst_15 {dimension_numbers = #tpu.dot_dimension_numbers<[1], [0], [0], [1], [0, 0, 1, 1], [], []>} : vector<32x4xf32>, vector<4x128xf32>, vector<32x128xf32> -> vector<32x128xf32>
    %20 = arith.addf %15, %19 : vector<32x128xf32>
    %c2 = arith.constant 2 : index
    %c0_16 = arith.constant 0 : index
    %c0_17 = arith.constant 0 : index
    %21 = vector.load %arg3[%c2, %c0_16, %c0_17] : memref<3x32x4xf32, #tpu.memory_space<vmem>>, vector<1x32x4xf32>
    %22 = vector.shape_cast %21 : vector<1x32x4xf32> to vector<32x4xf32>
    %c0_18 = arith.constant 0 : index
    %c128_19 = arith.constant 128 : index
    %23 = vector.load %arg8[%c0_18, %c128_19] : memref<4x256xf32, #tpu.memory_space<vmem>>, vector<4x128xf32>
    %cst_20 = arith.constant dense<0.000000e+00> : vector<32x128xf32>
    %24 = tpu.matmul %22, %23, %cst_20 {dimension_numbers = #tpu.dot_dimension_numbers<[1], [0], [0], [1], [0, 0, 1, 1], [], []>} : vector<32x4xf32>, vector<4x128xf32>, vector<32x128xf32> -> vector<32x128xf32>
    %25 = arith.addf %20, %24 : vector<32x128xf32>
    %cst_21 = arith.constant 0.000000e+00 : f32
    %26 = vector.broadcast %cst_21 : f32 to vector<32x128xf32>
    %27 = arith.maximumf %25, %26 : vector<32x128xf32>
    %c0_22 = arith.constant 0 : index
    %c128_23 = arith.constant 128 : index
    %28 = vector.load %arg9[%c0_22, %c128_23] : memref<32x256xf32, #tpu.memory_space<vmem>>, vector<32x128xf32>
    tpu.vector_store %arg9[%c0_22, %c128_23], %27 {strides = array<i32>} : memref<32x256xf32, #tpu.memory_space<vmem>>, vector<32x128xf32>,
    %c0_24 = arith.constant 0 : index
    %c0_25 = arith.constant 0 : index
    %c0_26 = arith.constant 0 : index
    %29 = vector.load %arg5[%c0_24, %c0_25, %c0_26] : memref<3x32x32xf32, #tpu.memory_space<vmem>>, vector<1x32x32xf32>
    %30 = vector.shape_cast %29 : vector<1x32x32xf32> to vector<32x32xf32>
    %c0_27 = arith.constant 0 : index
    %c126_28 = arith.constant 126 : index
    %31 = vector.load %arg9[%c0_27, %c126_28] : memref<32x256xf32, #tpu.memory_space<vmem>>, vector<32x128xf32>
    %cst_29 = arith.constant dense<0.000000e+00> : vector<32x128xf32>
    %32 = tpu.matmul %30, %31, %cst_29 {dimension_numbers = #tpu.dot_dimension_numbers<[1], [0], [0], [1], [0, 0, 1, 1], [], []>} : vector<32x32xf32>, vector<32x128xf32>, vector<32x128xf32> -> vector<32x128xf32>
    %c0_30 = arith.constant 0 : index
    %c0_31 = arith.constant 0 : index
    %33 = vector.load %arg6[%c0_30, %c0_31] : memref<32x1xf32, #tpu.memory_space<vmem>>, vector<32x1xf32>
    %34 = vector.broadcast %33 : vector<32x1xf32> to vector<32x128xf32>
    %35 = arith.addf %32, %34 : vector<32x128xf32>
    %c1_32 = arith.constant 1 : index
    %c0_33 = arith.constant 0 : index
    %c0_34 = arith.constant 0 : index
    %36 = vector.load %arg5[%c1_32, %c0_33, %c0_34] : memref<3x32x32xf32, #tpu.memory_space<vmem>>, vector<1x32x32xf32>
    %37 = vector.shape_cast %36 : vector<1x32x32xf32> to vector<32x32xf32>
    %c0_35 = arith.constant 0 : index
    %c127_36 = arith.constant 127 : index
    %38 = vector.load %arg9[%c0_35, %c127_36] : memref<32x256xf32, #tpu.memory_space<vmem>>, vector<32x128xf32>
    %cst_37 = arith.constant dense<0.000000e+00> : vector<32x128xf32>
    %39 = tpu.matmul %37, %38, %cst_37 {dimension_numbers = #tpu.dot_dimension_numbers<[1], [0], [0], [1], [0, 0, 1, 1], [], []>} : vector<32x32xf32>, vector<32x128xf32>, vector<32x128xf32> -> vector<32x128xf32>
    %40 = arith.addf %35, %39 : vector<32x128xf32>
    %c2_38 = arith.constant 2 : index
    %c0_39 = arith.constant 0 : index
    %c0_40 = arith.constant 0 : index
    %41 = vector.load %arg5[%c2_38, %c0_39, %c0_40] : memref<3x32x32xf32, #tpu.memory_space<vmem>>, vector<1x32x32xf32>
    %42 = vector.shape_cast %41 : vector<1x32x32xf32> to vector<32x32xf32>
    %c0_41 = arith.constant 0 : index
    %c128_42 = arith.constant 128 : index
    %43 = vector.load %arg9[%c0_41, %c128_42] : memref<32x256xf32, #tpu.memory_space<vmem>>, vector<32x128xf32>
    %cst_43 = arith.constant dense<0.000000e+00> : vector<32x128xf32>
    %44 = tpu.matmul %42, %43, %cst_43 {dimension_numbers = #tpu.dot_dimension_numbers<[1], [0], [0], [1], [0, 0, 1, 1], [], []>} : vector<32x32xf32>, vector<32x128xf32>, vector<32x128xf32> -> vector<32x128xf32>
    %45 = arith.addf %40, %44 : vector<32x128xf32>
    %cst_44 = arith.constant 0.000000e+00 : f32
    %46 = vector.broadcast %cst_44 : f32 to vector<32x128xf32>
    %47 = arith.maximumf %45, %46 : vector<32x128xf32>
    %c0_45 = arith.constant 0 : index
    %c0_46 = arith.constant 0 : index
    %c0_47 = arith.constant 0 : index
    %48 = vector.load %arg7[%c0_45, %c0_46, %c0_47] : memref<1x32x128xf32, #tpu.memory_space<vmem>>, vector<1x32x128xf32>
    %49 = vector.shape_cast %48 : vector<1x32x128xf32> to vector<32x128xf32>
    %50 = vector.shape_cast %47 : vector<32x128xf32> to vector<1x32x128xf32>
    tpu.vector_store %arg7[%c0_45, %c0_46, %c0_47], %50 {strides = array<i32>} : memref<1x32x128xf32, #tpu.memory_space<vmem>>, vector<1x32x128xf32>,
    return
  }
  func.func @transform_0(%arg0: i32, %arg1: i32) -> (i32, i32, i32) {
    %c0_i32 = arith.constant 0 : i32
    %c0_i32_0 = arith.constant 0 : i32
    return %arg0, %c0_i32, %arg1 : i32, i32, i32
  }
  func.func @transform_1(%arg0: i32, %arg1: i32) -> (i32, i32, i32) {
    %c0_i32 = arith.constant 0 : i32
    %c0_i32_0 = arith.constant 0 : i32
    %c0_i32_1 = arith.constant 0 : i32
    %c0_i32_2 = arith.constant 0 : i32
    return %c0_i32, %c0_i32_0, %c0_i32_1 : i32, i32, i32
  }
  func.func @transform_2(%arg0: i32, %arg1: i32) -> (i32, i32) {
    %c0_i32 = arith.constant 0 : i32
    %c0_i32_0 = arith.constant 0 : i32
    %c0_i32_1 = arith.constant 0 : i32
    return %c0_i32, %c0_i32_0 : i32, i32
  }
  func.func @transform_3(%arg0: i32, %arg1: i32) -> (i32, i32, i32) {
    %c0_i32 = arith.constant 0 : i32
    %c0_i32_0 = arith.constant 0 : i32
    %c0_i32_1 = arith.constant 0 : i32
    %c0_i32_2 = arith.constant 0 : i32
    return %c0_i32, %c0_i32_0, %c0_i32_1 : i32, i32, i32
  }
  func.func @transform_4(%arg0: i32, %arg1: i32) -> (i32, i32) {
    %c0_i32 = arith.constant 0 : i32
    %c0_i32_0 = arith.constant 0 : i32
    %c0_i32_1 = arith.constant 0 : i32
    return %c0_i32, %c0_i32_0 : i32, i32
  }
  func.func @transform_5(%arg0: i32, %arg1: i32) -> (i32, i32, i32) {
    %c0_i32 = arith.constant 0 : i32
    %c0_i32_0 = arith.constant 0 : i32
    return %arg0, %c0_i32, %arg1 : i32, i32, i32
  }
}

</mosaic_0001>

<bundles_post_ra>
// kernel: tpu_custom_call.1
= control target key start
LH: loop header
LB: loop body
LE: loop exit
PB: predicated region body
PF: predicated region fallthrough
CT: control target
= control target key end

     0   :  { %10 = vsyncpa [#allocation5], 0  ;;  %s1859_s0 = inlined_call_operand.vmem [shape: f32[2,4,128], index: 0, kind: input, shape index: {}]   ;;  %s1860_s1 = inlined_call_operand.vmem [shape: f32[3,32,4], index: 1, kind: input, shape index: {}]   ;;  %s1861_s2 = inlined_call_operand.vmem [shape: f32[32,1], index: 2, kind: input, shape index: {}]   ;;  %s1862_s3 = inlined_call_operand.vmem [shape: f32[3,32,32], index: 3, kind: input, shape index: {}]   ;;  %s1863_s4 = inlined_call_operand.vmem [shape: f32[32,1], index: 4, kind: input, shape index: {}]   ;;  %s1864_s5 = inlined_call_operand.hbm [shape: f32[2,32,128], index: 5, kind: output, shape index: {}]  }
   0x1   :  { %12 = vsyncpa [#allocation5 + $0x1], 0  ;;  %s1579_s18 = smov 0   ;;  %s1581_s19 = smov 0  }
   0x2   :  { %s1583_s20 = smov 0   ;;  %s1585_s21 = smov 0  }
   0x3   :  { %s1587_s22 = smov 0   ;;  %s1589_s23 = smov 0  }
   0x4 LB: > { %s1145_s24 = sadd.s32 4294967295, %s1540_s23   ;;  %s1146_s25 = sadd.s32 4294967294, %s1540_s23   ;;  %s1540_s23 = sphi %s1589_s23, %s18_s23   ;;  %s1536_s22 = sphi %s1587_s22, %s1871_s22   ;;  %s1532_s21 = sphi %s1585_s21, %s1870_s21   ;;  %s1528_s20 = sphi %s1583_s20, %s1869_s20   ;;  %s1524_s19 = sphi %s1581_s19, %s1868_s19   ;;  %s1520_s18 = sphi %s1579_s18, %s1867_s18  }
   0x5   : > { %s30_s26 = sadd.s32 1, %s1536_s22  ;;  %s151_s27 = sadd.s32 1, %s1528_s20 }
   0x6   : > { %p32_p0 = scmp.ge.s32.totalorder %s30_s26, 2  ;;  %p161_p1 = scmp.ne.s32.totalorder %s1528_s20, %s1524_s19 }
   0x7   : > { %p162_p2 = scmp.eq.s32.totalorder %s1145_s24, 1  ;;  %p167_p3 = scmp.ne.s32.totalorder %s1524_s19, %s1520_s18 }
   0x8   : > { %s1873_s26 = smov (%p32_p0, %s30_s26), 0  ;;  %p168_p5 = scmp.eq.s32.totalorder %s1146_s25, 1 }
   0x9   : > { %p1619_p4 = por %p162_p2, %p161_p1  ;;  %s146_s29 = ssub.s32 %s1536_s22, %s1873_s26 }
   0xa   : > { %p1149_p6 = scmp.ge.s32.totalorder %s1540_s23, 1  ;;  %p149_p7 = scmp.eq.s32.totalorder %s146_s29, 0 }
   0xb   : > { %p1626_p8 = por %p168_p5, %p167_p3  ;;  %p208_p9 = scmp.lt.s32.totalorder %s1540_s23, 3 }
   0xc   : > { %s1632_s6 = scalar_select %p149_p7, %s1528_s20, %s151_s27  }
   0xd   : > { %p209_p10 = pnand %p1149_p6, %p208_p9 }
   0xe   : > { %p238_p11 = scmp.lt.s32.totalorder (!%p209_p10), %s1532_s21, 1  ;;  %v1542_v0 = vmov (!%p209_p10), 0.0   ;;  %v272_v2 = vld [vmem:[%s1860_s1] sm:$0xff] (!%p209_p10)  ;;  %vm309_vm0 = vcmask (!%p209_p10), 31744   ;;  %s1543_s14 = smov (!%p209_p10), 1   ;;  %v278_v5 = vld [vmem:[%s1861_s2 + $0x8] sm:$0xff] (!%p209_p10) }
   0xf   : > { %212 = sbr.rel (%p209_p10) target bundleno = 772 (0x304), region = 40  ;;  %249 = vst [vmem:[#allocation2] sm:$0xf] (!%p209_p10), %v1542_v0  ;;  %1242 = vmatprep.mubr.msk.f32.mxu0 (!%p209_p10), %vm309_vm0, %v272_v2  ;;  %s1544_s15 = smov (!%p209_p10), 2   ;;  %v277_v6 = vld [vmem:[%s1861_s2] sm:$0xff] (!%p209_p10)  ;;  %v1545_v7 = vmov (!%p209_p10), 0  }
  0x10   : > { %1420 = vset.pattern.permute.xlu1 (!%p209_p10), %v1545_v7  ;;  %1419 = vset.pattern.permute.xlu0 (!%p209_p10), %v1545_v7  ;;  %v279_v8 = vld [vmem:[%s1861_s2 + $0x10] sm:$0xff] (!%p209_p10)  ;;  %v280_v9 = vld [vmem:[%s1861_s2 + $0x18] sm:$0xff] (!%p209_p10)  ;;  %vm422_vm1 = vcmask (!%p209_p10), 7168   ;;  %vm307_vm2 = vcmask (!%p209_p10), 15360   ;;  %vm322_vm3 = vcmask (!%p209_p10), 1043456   ;;  %v273_v16 = vld [vmem:[%s1860_s1 + $0x8] sm:$0xff] (!%p209_p10) }
  0x11   : > { %v274_v17 = vld [vmem:[%s1860_s1 + $0x10] sm:$0xff] (!%p209_p10)  ;;  %v275_v19 = vld [vmem:[%s1860_s1 + $0x18] sm:$0xff] (!%p209_p10)  ;;  %v1157_v20 = vld [vmem:[%s1860_s1 + $0x20] sm:$0xff] (!%p209_p10)  ;;  %vm713_vm4 = vcmask (!%p209_p10), 261120   ;;  %s1546_s17 = smov (!%p209_p10), [#allocation4]  }
  0x12   : > { %v1158_v21 = vld [vmem:[%s1860_s1 + $0x28] sm:$0xff] (!%p209_p10)  ;;  %v1159_v22 = vld [vmem:[%s1860_s1 + $0x30] sm:$0xff] (!%p209_p10)  ;;  %v1160_v23 = vld [vmem:[%s1860_s1 + $0x38] sm:$0xff] (!%p209_p10)  ;;  %s1466_s24 = sshll.u32 (!%p209_p10), %s1546_s17, 4  ;;  %s1467_s24 = int_to_ptr.vmem [resolvable:$false] %s1466_s24 }
  0x13   : > { %v1166_v24 = vld [vmem:[%s1860_s1 + $0x40] sm:$0xff] (!%p209_p10)  ;;  %v1167_v25 = vld [vmem:[%s1860_s1 + $0x48] sm:$0xff] (!%p209_p10)  ;;  %v1168_v26 = vld [vmem:[%s1860_s1 + $0x50] sm:$0xff] (!%p209_p10)  ;;  %s1468_s25 = scalar_lea.vmem (!%p209_p10), %s1467_s24, 1024 }
  0x14   : > { %v1169_v27 = vld [vmem:[%s1860_s1 + $0x58] sm:$0xff] (!%p209_p10)  ;;  %v645_v45 = vld [vmem:[%s1862_s3] sm:$0xff] (!%p209_p10)  ;;  %v1188_v52 = vld [vmem:[%s1862_s3 + $0x48] sm:$0xff] (!%p209_p10) }
  0x15   : > { %1272 = vmatprep.mubr.msk.f32.mxu1 (!%p209_p10), %vm713_vm4, %v645_v45  ;;  %v1187_v51 = vld [vmem:[%s1862_s3 + $0x40] sm:$0xff] (!%p209_p10)  ;;  %v658_v53 = vld [vmem:[%s1863_s4 + $0x8] sm:$0xff] (!%p209_p10)  ;;  %v660_v55 = vld [vmem:[%s1863_s4 + $0x18] sm:$0xff] (!%p209_p10) }
  0x16   : > { %s239_s7 = scalar_select %p238_p11, %s1532_s21, 1  ;;  %v657_v54 = vld [vmem:[%s1863_s4] sm:$0xff]  ;;  %v659_v56 = vld [vmem:[%s1863_s4 + $0x10] sm:$0xff] }
  0x18   : > { %s1151_s8 = sshll.u32 %s239_s7, 2  ;;  %s235_s7 = sand.u32 1, %s1524_s19  }
  0x19   : > { %s244_s11 = scalar_lea.vmem %s1859_s0, %s1151_s8  ;;  %s1150_s8 = sshll.u32 %s235_s7, 5 }
  0x1a   : > { %v270_v1 = vld [vmem:[%s244_s11] sm:$0xf]  ;;  %s237_s9 = scalar_lea.vmem [#allocation4], %s1150_s8  ;;  %s1813_s16 = scalar_lea.sflag [#allocation5], %s235_s7 }
  0x1b   : > { %271 = vst [vmem:[#allocation2 + $0x4] sm:$0xf] %v270_v1  ;;  %s1070_s10 = sshll.u32 %s237_s9, 4  ;;  %s1806_s10 = int_to_ptr.vmem [resolvable:$true] %s1070_s10 }
  0x1c   : > { %p1469_p1 = scmp.lt.s32.totalorder %s1806_s10, %s1467_s24 }
  0x22   : > { %v415_v3 = vld [vmem:[#allocation2] sm:$0xff] }
  0x23   : > { %418 = vrot.lane.b32.xlu1 %v415_v3, %s1543_s14  ;;  %v417_v4 = vcombine.high %v415_v3, %v415_v3  ;;  %303 = vrot.lane.b32.xlu0 %v415_v3, %s1544_s15  ;;  %v532_v18 = vld [vmem:[#allocation2 + $0x4] sm:$0xf] }
  0x27   : > { %420 = vrot.lane.b32.xlu1 %v417_v4, %s1543_s14  ;;  %305 = vrot.lane.b32.xlu0 %v417_v4, %s1544_s15 }
  0x2b   : > { %288 = vperm.xlu1 %1420, %v278_v5   ;;  %283 = vperm.xlu0 %1419, %v277_v6  }
  0x2f   : > { %293 = vperm.xlu1 %1420, %v279_v8   ;;  %298 = vperm.xlu0 %1419, %v280_v9  }
  0x95   : > { %v419_v10 = vpop.permute.xlu1 %418  ;;  %v304_v11 = vpop.permute.xlu0 %303 }
  0x99   : > { %v421_v12 = vpop.permute.xlu1 %420  ;;  %v306_v13 = vpop.permute.xlu0 %305 }
  0x9a   : > { %v423_v14 = vsel %vm422_vm1, %v419_v10, %v421_v12  ;;  %v308_v15 = vsel %vm307_vm2, %v304_v11, %v306_v13 }
  0x9b   : > { %1240 = vmatprep.subr.msk.mxu0 %vm322_vm3, %v308_v15 }
  0x9c   : > { %1241 = vmatpush3.msk.msra.mxu0 %vm322_vm3, %v308_v15 }
  0x9d   : > { %1243 = vmatmul.mubr.msk.f32.vlgmr.msra.gmra.mrb[0].mxu0 %vm309_vm0, %v273_v16  ;;  %1248 = vmatprep.subr.msk.mxu0 %vm322_vm3, %v423_v14 }
  0x9e   : > { %1249 = vmatpush3.msk.msra.mxu0 %vm322_vm3, %v423_v14  ;;  %1245 = vmatprep.mubr.msk.f32.mxu0 %vm309_vm0, %v274_v17 }
  0x9f   : > { %1256 = vmatprep.subr.msk.mxu0 %vm322_vm3, %v532_v18 }
  0xa1   : > { %1246 = vmatmul.mubr.msk.f32.gmra.mrb[2].mxu0 %vm309_vm0, %v275_v19  ;;  %v646_v19 = vld [vmem:[%s1862_s3 + $0x8] sm:$0xff] }
  0xa2   : > { %1250 = vmatprep.mubr.msk.f32.mxu0 %vm309_vm0, %v1157_v20 }
  0xa5   : > { %1251 = vmatmul.mubr.msk.f32.vlgmr.msra.gmra.mrb[0].mxu0 %vm309_vm0, %v1158_v21 }
  0xa6   : > { %1257 = vmatpush3.msk.msra.mxu0 %vm322_vm3, %v532_v18  ;;  %1253 = vmatprep.mubr.msk.f32.mxu0 %vm309_vm0, %v1159_v22 }
  0xa9   : > { %1254 = vmatmul.mubr.msk.f32.gmra.mrb[2].mxu0 %vm309_vm0, %v1160_v23 }
  0xaa   : > { %1258 = vmatprep.mubr.msk.f32.mxu0 %vm309_vm0, %v1166_v24  ;;  %v284_v28 = vpop.permute.xlu0 %283  ;;  %v289_v29 = vpop.permute.xlu1 %288 }
  0xad   : > { %1259 = vmatmul.mubr.msk.f32.vlgmr.msra.gmra.mrb[0].mxu0 %vm309_vm0, %v1167_v25  ;;  %v647_v25 = vld [vmem:[%s1862_s3 + $0x10] sm:$0xff] }
  0xae   : > { %1261 = vmatprep.mubr.msk.f32.mxu0 %vm309_vm0, %v1168_v26  ;;  %v299_v36 = vpop.permute.xlu0 %298  ;;  %v294_v38 = vpop.permute.xlu1 %293 }
  0xb1   : > { %1262 = vmatmul.mubr.msk.f32.gmra.mrb[2].mxu0 %vm309_vm0, %v1169_v27 }
  0xb2   : > { %1300 = vmatprep.mubr.msk.f32.mxu0 %vm713_vm4, %v1187_v51 }
 0x180   : > { %v1260_v30 = vpop.f32.mrb[0].mxu0 }
 0x181   : > { %v1334_v31 = vadd.f32 %v1260_v30, %v289_v29  ;;  %v614_v32 = vpop.f32.mrb[1].mxu0  ;;  %v648_v29 = vld [vmem:[%s1862_s3 + $0x18] sm:$0xff] }
 0x182   : > { %v1335_v33 = vadd.f32 %v614_v32, %v284_v28  ;;  %v1179_v32 = vld [vmem:[%s1862_s3 + $0x20] sm:$0xff] }
 0x183   : > { %v638_v34 = vmax.f32 %v1334_v31, 0.0 }
 0x184   : > { %v637_v35 = vmax.f32 %v1335_v33, 0.0  ;;  %v1263_v37 = vpop.f32.mrb[2].mxu0  ;;  %v1180_v33 = vld [vmem:[%s1862_s3 + $0x28] sm:$0xff] }
 0x185   : > { %v1336_v39 = vadd.f32 %v1263_v37, %v299_v36  ;;  %v624_v40 = vpop.f32.mrb[3].mxu0  ;;  %v1421_v41 = vpack.i.bf16 %v638_v34, %v1542_v0  ;;  %v1189_v36 = vld [vmem:[%s1862_s3 + $0x50] sm:$0xff]  ;;  %v1190_v37 = vld [vmem:[%s1862_s3 + $0x58] sm:$0xff] }
 0x186   : > { %v1713_v42 = vpack.c.bf16 %v638_v34, %v637_v35  ;;  %v1337_v43 = vadd.f32 %v624_v40, %v294_v38  ;;  %v1426_v44 = vpack.i.bf16 %v637_v35, %v1542_v0  ;;  %v1181_v34 = vld [vmem:[%s1862_s3 + $0x30] sm:$0xff]  ;;  %v1182_v35 = vld [vmem:[%s1862_s3 + $0x38] sm:$0xff] }
 0x187   : > { %v640_v46 = vmax.f32 %v1336_v39, 0.0  ;;  %1422 = vrot.lane.b32.xlu0 %v1421_v41, %s1544_s15 }
 0x188   : > { %v639_v47 = vmax.f32 %v1337_v43, 0.0  ;;  %1427 = vrot.lane.b32.xlu1 %v1426_v44, %s1544_s15  ;;  %1323 = vmatprep.subr.bf16.mxu0 %v1713_v42 }
 0x189   : > { %1325 = vmatpush3.bf16.msra.mxu0 %v1713_v42  ;;  %v1431_v48 = vpack.i.bf16 %v640_v46, %v1542_v0 }
 0x18a   : > { %v1725_v49 = vpack.c.bf16 %v640_v46, %v639_v47  ;;  %v1436_v50 = vpack.i.bf16 %v639_v47, %v1542_v0 }
 0x18b   : > { %1432 = vrot.lane.b32.xlu0 %v1431_v48, %s1544_s15 }
 0x18c   : > { %1437 = vrot.lane.b32.xlu1 %v1436_v50, %s1544_s15  ;;  %1327 = vmatprep.subr.bf16.mxu0 %v1725_v49  ;;  %s1200_s15 = sshll.u32 %s1532_s21, 9  ;;  %s1462_s21 = scalar_lea.vmem %s1806_s10, 512 }
 0x18d   : > { %1329 = vmatpush3.bf16.msra.mxu0 %v1725_v49  ;;  %s1811_s13 = scalar_lea.hbm %s1864_s5, %s1200_s15  ;;  %p1463_p12 = scmp.ne.s32.totalorder %s1806_s10, %s1462_s21 }
 0x18e   : > { %p1470_p2 = scmp.lt.s32.totalorder %s1468_s25, %s1462_s21 }
 0x18f   : > { %1447 = vrot.lane.b32.xlu0 %v1421_v41, %s1543_s14  ;;  %p1464_p13 = pnand %p1463_p12, %p1619_p4 }
 0x190   : > { %1442 = vrot.lane.b32.xlu1 %v1426_v44, %s1543_s14  ;;  %1301 = vmatmul.mubr.msk.f32.vlgmr.msra.gmra.mrb[4].mxu0 %vm713_vm4, %v1188_v52  ;;  %p1471_p3 = por %p1470_p2, %p1469_p1 }
 0x191   : > { %p1465_p0 = pneg %p1464_p13 }
 0x193   : > { %1457 = vrot.lane.b32.xlu0 %v1431_v48, %s1543_s14  ;;  %p1472_p5 = pnand %p1471_p3, %p1465_p0 }
 0x194   : > { %1452 = vrot.lane.b32.xlu1 %v1436_v50, %s1543_s14 }
 0x197   : > { %668 = vperm.xlu0 %1419, %v658_v53  }
 0x198   : > { %663 = vperm.xlu1 %1420, %v657_v54  }
 0x19b   : > { %678 = vperm.xlu0 %1419, %v660_v55  }
 0x19c   : > { %673 = vperm.xlu1 %1420, %v659_v56  }
 0x1f9   : > { %v1423_v57 = vpop.permute.xlu0 %1422 }
 0x1fa   : > { %v1425_v58 = vunpack.i.h.bf16 %v1423_v57  ;;  %v1424_v59 = vunpack.i.l.bf16 %v1423_v57  ;;  %v1428_v60 = vpop.permute.xlu1 %1427 }
 0x1fb   : > { %v1430_v61 = vunpack.i.h.bf16 %v1428_v60  ;;  %v1429_v62 = vunpack.i.l.bf16 %v1428_v60 }
 0x1fc   : > { %v706_v63 = vsel %vm307_vm2, %v1424_v59, %v1425_v58 }
 0x1fd   : > { %v1433_v0 = vpop.permute.xlu0 %1432  ;;  %v705_v1 = vsel %vm307_vm2, %v1429_v62, %v1430_v61 }
 0x1fe   : > { %v1435_v2 = vunpack.i.h.bf16 %v1433_v0  ;;  %v1434_v3 = vunpack.i.l.bf16 %v1433_v0  ;;  %v1438_v4 = vpop.permute.xlu1 %1437  ;;  %v1306_v5 = vpack.c.bf16 %v706_v63, %v705_v1 }
 0x1ff   : > { %v1440_v6 = vunpack.i.h.bf16 %v1438_v4  ;;  %v1439_v7 = vunpack.i.l.bf16 %v1438_v4 }
 0x200   : > { %1307 = vmatprep.subr.bf16.mxu1 %v1306_v5  ;;  %v708_v8 = vsel %vm307_vm2, %v1434_v3, %v1435_v2 }
 0x201   : > { %v1448_v9 = vpop.permute.xlu0 %1447  ;;  %1309 = vmatpush3.bf16.msra.mxu1 %v1306_v5  ;;  %v707_v10 = vsel %vm307_vm2, %v1439_v7, %v1440_v6 }
 0x202   : > { %v1450_v11 = vunpack.i.h.bf16 %v1448_v9  ;;  %v1449_v12 = vunpack.i.l.bf16 %v1448_v9  ;;  %v1443_v13 = vpop.permute.xlu1 %1442  ;;  %v1310_v14 = vpack.c.bf16 %v708_v8, %v707_v10 }
 0x203   : > { %v1445_v15 = vunpack.i.h.bf16 %v1443_v13  ;;  %v1444_v16 = vunpack.i.l.bf16 %v1443_v13 }
 0x204   : > { %1311 = vmatprep.subr.bf16.mxu1 %v1310_v14  ;;  %v833_v17 = vsel %vm422_vm1, %v1449_v12, %v1450_v11 }
 0x205   : > { %v1458_v18 = vpop.permute.xlu0 %1457  ;;  %1313 = vmatpush3.bf16.msra.mxu1 %v1310_v14  ;;  %v832_v20 = vsel %vm422_vm1, %v1444_v16, %v1445_v15 }
 0x206   : > { %v1460_v21 = vunpack.i.h.bf16 %v1458_v18  ;;  %v1459_v22 = vunpack.i.l.bf16 %v1458_v18  ;;  %v1453_v23 = vpop.permute.xlu1 %1452  ;;  %v1314_v24 = vpack.c.bf16 %v833_v17, %v832_v20 }
 0x207   : > { %v1455_v26 = vunpack.i.h.bf16 %v1453_v23  ;;  %v1454_v27 = vunpack.i.l.bf16 %v1453_v23 }
 0x208   : > { %1273 = vmatmul.mubr.msk.f32.vlgmr.msra.gmra.mrb[0].mxu1 %vm713_vm4, %v646_v19  ;;  %1315 = vmatprep.subr.bf16.mxu1 %v1314_v24  ;;  %v835_v28 = vsel %vm422_vm1, %v1459_v22, %v1460_v21 }
 0x209   : > { %1317 = vmatpush3.bf16.msra.mxu1 %v1314_v24  ;;  %1275 = vmatprep.mubr.msk.f32.mxu1 %vm713_vm4, %v647_v25  ;;  %v834_v30 = vsel %vm422_vm1, %v1454_v27, %v1455_v26 }
 0x20a   : > { %v1318_v31 = vpack.c.bf16 %v835_v28, %v834_v30 }
 0x20c   : > { %1276 = vmatmul.mubr.msk.f32.gmra.mrb[2].mxu1 %vm713_vm4, %v648_v29  ;;  %1319 = vmatprep.subr.bf16.mxu1 %v1318_v31 }
 0x20d   : > { %1321 = vmatpush3.bf16.msra.mxu1 %v1318_v31  ;;  %1286 = vmatprep.mubr.msk.f32.mxu1 %vm713_vm4, %v1179_v32 }
 0x20e   : > { %1330 = vmatprep.subr.bf16.mxu1 %v1713_v42 }
 0x210   : > { %1287 = vmatmul.mubr.msk.f32.vlgmr.msra.gmra.mrb[0].mxu1 %vm713_vm4, %v1180_v33 }
 0x211   : > { %1332 = vmatpush3.bf16.msra.mxu1 %v1713_v42  ;;  %1289 = vmatprep.mubr.msk.f32.mxu1 %vm713_vm4, %v1181_v34 }
 0x212   : > { %1331 = vmatprep.subr.bf16.mxu1 %v1725_v49 }
 0x214   : > { %1290 = vmatmul.mubr.msk.f32.gmra.mrb[2].mxu1 %vm713_vm4, %v1182_v35 }
 0x215   : > { %1333 = vmatpush3.bf16.msra.mxu1 %v1725_v49  ;;  %1303 = vmatprep.mubr.msk.f32.mxu1 %vm713_vm4, %v1189_v36 }
 0x216   : > { %v669_v40 = vpop.permute.xlu0 %668 }
 0x217   : > { %v664_v42 = vpop.permute.xlu1 %663 }
 0x21a   : > { %v679_v50 = vpop.permute.xlu0 %678 }
 0x21b   : > { %v674_v52 = vpop.permute.xlu1 %673 }
 0x21c   : > { %1304 = vmatmul.mubr.msk.f32.vlgmr.msra.gmra.mrb[2].mxu1 %vm713_vm4, %v1190_v37 }
 0x263   : > { %v1302_v38 = vpop.f32.mrb[4].mxu0 }
 0x264   : > { %v1024_v39 = vpop.f32.mrb[5].mxu0 }
 0x2e3   : > { %v1288_v41 = vpop.f32.mrb[0].mxu1 }
 0x2e4   : > { %v1338_v43 = vadd.f32 %v1288_v41, %v669_v40  ;;  %v918_v44 = vpop.f32.mrb[1].mxu1 }
 0x2e5   : > { %v1340_v45 = vadd.f32 %v918_v44, %v664_v42 }
 0x2e6   : > { %v1339_v46 = vadd.f32 %v1338_v43, %v1302_v38 }
 0x2e7   : > { %v1341_v47 = vadd.f32 %v1340_v45, %v1024_v39 }
 0x2e8   : > { %v1048_v48 = vmax.f32 %v1339_v46, 0.0 }
 0x2e9   : > { %v1047_v49 = vmax.f32 %v1341_v47, 0.0 }
 0x2ea   : > { %1052 = vst [vmem:[%s237_s9 + $0x8] sm:$0xff] %v1048_v48 }
 0x2eb   : > { %1051 = vst [vmem:[%s237_s9] sm:$0xff] %v1047_v49 }
 0x2ef   : > { %v1305_v51 = vpop.f32.mrb[2].mxu1 }
 0x2f0   : > { %v1342_v53 = vadd.f32 %v1305_v51, %v679_v50  ;;  %v1034_v54 = vpop.f32.mrb[3].mxu1 }
 0x2f1   : > { %v1343_v55 = vadd.f32 %v1034_v54, %v674_v52 }
 0x2f2   : > { %v1050_v56 = vmax.f32 %v1342_v53, 0.0 }
 0x2f3   : > { %v1049_v57 = vmax.f32 %v1343_v55, 0.0 }
 0x2f4   : > { %1054 = vst [vmem:[%s237_s9 + $0x18] sm:$0xff] %v1050_v56 }
 0x2f5   : > { %1053 = vst [vmem:[%s237_s9 + $0x10] sm:$0xff] %v1049_v57 }
 0x2f6   : > { %1475 = shalt.err (!%p1472_p5)
}
 0x2f7   : > { %s1476_s14 = scalar_lea.hbm %s1811_s13, 512  ;;  %s1480_s7 = scalar_lea.hbm %s1864_s5, 1024 }
 0x2f8   : > { %p1477_p6 = scmp.ne.s32.totalorder %s1811_s13, %s1476_s14  ;;  %p1481_p10 = scmp.lt.u32.totalorder %s1811_s13, %s1864_s5 }
 0x2f9   : > { %p1482_p11 = scmp.lt.u32.totalorder %s1480_s7, %s1476_s14  ;;  %p1484_p13 = scmp.lt.u32.totalorder %s1476_s14, %s1811_s13 }
 0x2fa   : > { %p1478_p7 = pnand %p1477_p6, %p1619_p4 }
 0x2fb   : > { %p1483_p12 = por %p1482_p11, %p1481_p10 }
 0x2fc   : > { %p1479_p9 = pneg %p1478_p7 }
 0x2fd   : > { %p1485_p0 = por %p1484_p13, %p1483_p12 }
 0x2ff   : > { %p1486_p1 = pnand %p1485_p0, %p1479_p9 }
 0x301   : > { %1489 = shalt.err (!%p1486_p1)
}
 0x302   : > { %s1547_s15 = smov 128   ;;  %s1548_s11 = smov 8  }
 0x303   : > { %1358 = dma.vmem_to_hbm [thread:$0]  (%p1619_p4), %s1806_s10, 512, %s1811_s13, %s1813_s16, %s1547_s15, %s1547_s15, %s1548_s11  }
 0x304 PF: > { %p1364_p2 = scmp.ge.s32.totalorder %s1540_s23, 2  ;;  %s1085_s12 = sand.u32 1, %s1520_s18  }
 0x305   : > { %s1086_s21 = scalar_lea.sflag [#allocation5], %s1085_s12 }
 0x306   : > { %p1361_p3 = pnand %p1364_p2, %p1626_p8 }
 0x308   : > { %1515 = dma.done.wait (!%p1361_p3), %s1086_s21, 512  }
 0x309   : > { %1517 = vsyncadd (!%p1361_p3), %s1086_s21, 4294966784  ;;  %s18_s23 = sadd.s32 1, %s1540_s23   ;;  %s1867_s18 = smov %s1524_s19 }
 0x30a   : > { %p15_p5 = scmp.ge.s32.totalorder %s18_s23, 4   ;;  %s1868_s19 = smov %s1528_s20 }
 0x30b   : > { %s1869_s20 = smov %s1632_s6  ;;  %s1870_s21 = smov %s1536_s22 }
 0x30c   : > { %s1871_s22 = smov %s1873_s26  ;;  %17 = sbr.rel (!%p15_p5) target bundleno = 4 (0x4), region = 87 }
 0x313   :  { %1091 = vsyncpa [#allocation5], 1 }
 0x314   :  { %1093 = vsyncpa [#allocation5 + $0x1], 1 }

</bundles_post_ra>
